<compile_context>
chip_gen: v7x
topology: tpu7x:2x2x1
jax: 0.10.0
libtpu: 0.0.40
codegen_flags: <defaults>
</compile_context>

<pallas_src>
import functools
import math

import jax
import jax.numpy as jnp
from jax.experimental import pallas as pl
from jax.experimental.pallas import tpu as pltpu

_HALF_LOG_2PI = 0.9189385332046727  # 0.5 * log(2*pi)


def _lgamma_digamma(x):
    """(lgamma(x), digamma(x)) for x >= 1 (true here: alpha_tilde >= 1).

    Shift the argument up by 6, evaluate Stirling / asymptotic series at z+6,
    then divide back down.  Abs error ~1e-6 plus the ~1e-4-relative error of
    the approximate EUP reciprocals (the KL term that consumes these is
    further scaled by epoch/T, so the impact on the loss is << 1e-3).
    Domain note: the two-log recurrence needs prod(x..x+3) finite in f32,
    i.e. x < ~4e9 (logits < ~22); beyond that it returns inf/NaN where the
    torch reference (finite up to logits ~ 88) does not.
    """
    z0 = x
    z1 = x + 1.0
    z2 = x + 2.0
    z3 = x + 3.0
    z4 = x + 4.0
    z5 = x + 5.0
    z6 = x + 6.0
    p01 = z0 * z1
    p23 = z2 * z3
    p45 = z4 * z5
    p0123 = p01 * p23
    prod = p0123 * p45
    # Two EUP logs replace six; split (vs one) keeps the recurrence finite
    # for much larger alpha_tilde (see docstring).
    log_prod = jnp.log(p0123) + jnp.log(p45)
    log_z6 = jnp.log(z6)
    zi = pl.reciprocal(z6, approx=True)          # EUP vrcp, no Newton refine
    zi2 = zi * zi
    # lgamma(z6) via Stirling, shifted back down by log_prod.
    lg_series = zi * (1.0 / 12.0 - zi2 * (1.0 / 360.0 - zi2 * (1.0 / 1260.0)))
    lg = (z6 - 0.5) * log_z6 - z6 + _HALF_LOG_2PI + lg_series - log_prod
    # digamma(z6) via the asymptotic series, minus sum_k 1/(x+k).  The six
    # reciprocals are rationalized onto ONE approximate reciprocal of prod;
    # the rest is VPU multiplies (VALUs have slack, EUP is the bottleneck).
    numer = ((z0 + z1) * (p23 * p45)
             + (z2 + z3) * (p01 * p45)
             + (z4 + z5) * p0123)
    recips = numer * pl.reciprocal(prod, approx=True)
    dg_series = zi2 * (1.0 / 12.0 - zi2 * (1.0 / 120.0 - zi2 * (1.0 / 252.0)))
    dg = log_z6 - 0.5 * zi - dg_series - recips
    return lg, dg


def _tlc_kernel(eot_ref, y_ref, x_ref, logit_ref, w_ref, out_ref, *,
                tau, lgamma_c, inv_b):
    epoch_over_T = eot_ref[0]                     # SMEM scalar: no recompile
    logits = logit_ref[...].astype(jnp.float32)   # (E, B, C) expert logits
    w = w_ref[...].astype(jnp.float32)            # (E, B, 1) expert weights
    y = y_ref[...]                                # (B, 1) int32 labels
    x = x_ref[...].astype(jnp.float32)            # (B, C) mean logits

    _, B, C = logits.shape

    # x-only softmax / entropy: computed once, shared by all experts.
    xm = jnp.max(x, axis=-1, keepdims=True)                           # (B,1)
    xe = jnp.exp(x - xm)                                              # (B,C)
    xs = jnp.sum(xe, axis=-1, keepdims=True)                          # (B,1)
    q = xe / xs                                                       # (B,C)
    log_q = (x - xm) - jnp.log(xs)                                    # (B,C)
    negent = jnp.sum(q * log_q, axis=-1, keepdims=True)               # (B,1)

    # Shared log-sum-exp over classes (used by NLL, log_softmax and S).
    m = jnp.max(logits, axis=-1, keepdims=True)                       # (E,B,1)
    e = jnp.exp(logits - m)                                           # (E,B,C)
    se = jnp.sum(e, axis=-1, keepdims=True)                           # (E,B,1)
    lse = m + jnp.log(se)                                             # (E,B,1)
    exp_m = jnp.exp(m)                                                # (E,B,1)

    # alpha = exp(logits) without a second full-width exp.
    alpha = e * exp_m                                                 # (E,B,C)
    S = se * exp_m                                                    # == exp(lse)

    # One-hot labels via lane iota (shared by all experts).
    # Note: out-of-range labels silently give logit_y = 0 (torch's gather
    # would error instead).
    cls_iota = jax.lax.broadcasted_iota(jnp.int32, (B, C), 1)
    yi = (cls_iota == y).astype(jnp.float32)[None]                    # (1,B,C)

    # NLL on log(alpha) - log(S):  log S - logit[y] == lse - logit[y].
    logit_y = jnp.sum(yi * logits, axis=-1, keepdims=True)            # (E,B,1)
    l = lse - logit_y

    # Dirichlet KL(alpha_tilde || uniform).
    alpha_t = alpha + 1.0 - yi * alpha                                # >= 1
    # S_tilde = sum(alpha_t) = S + C - alpha[y], with alpha[y] = exp(logit_y);
    # avoids another full-width class reduce.
    S_t = S + jnp.float32(C) - jnp.exp(logit_y)                       # (E,B,1)
    lg_a, dg_a = _lgamma_digamma(alpha_t)
    lg_S, dg_S = _lgamma_digamma(S_t)
    # sum((a-1)(dg(a)-dg(S))) - sum(lg(a))  fused into ONE class reduce,
    # with dg(S) factored out:  sum((a-1)dg(a) - lg(a)) - (S_t - C)dg(S).
    kl_sum = jnp.sum((alpha_t - 1.0) * dg_a - lg_a, axis=-1, keepdims=True)
    kl = lg_S - lgamma_c + kl_sum - (S_t - jnp.float32(C)) * dg_S     # (E,B,1)
    l = l + epoch_over_T * kl

    # -0.01 * KL(softmax(x) || softmax(logits))
    #   = -0.01 * (sum q log q - sum q log_p),  sum q log_p = sum(q*logits)-lse.
    cross = jnp.sum(q[None] * logits, axis=-1, keepdims=True) - lse   # (E,B,1)
    l = l - 0.01 * (negent[None] - cross)                             # (E,B,1)

    # Per-expert: mean over batch + tau-masked weighted mean (if any pass).
    mean_l = jnp.sum(l, axis=1, keepdims=True) * inv_b                # (E,1,1)
    wmask = (w > tau).astype(jnp.float32)                             # (E,B,1)
    wsum = jnp.sum(wmask, axis=1, keepdims=True)                      # (E,1,1)
    weighted = jnp.sum(wmask * l, axis=1, keepdims=True)              # (E,1,1)
    wmean = weighted / jnp.maximum(wsum, 1.0)   # guard: no NaN when wsum == 0
    contrib = mean_l + jnp.where(wsum > 0.0, wmean, 0.0)              # (E,1,1)

    out_ref[...] = jnp.reshape(jnp.sum(contrib), (1, 1))


class TLCLoss:
    """JAX/Pallas port of EMGTLC TLCLoss (forward pass only)."""

    def __init__(self, cls_num_list, max_m=0.5, tau=0.5, sigma=0.01):
        cls_num = jnp.asarray(cls_num_list, dtype=jnp.float32)
        # m_list / frequency_list mirror the torch __init__ but are unused by
        # forward(); kept for shape/semantics fidelity.
        m_list = 1.0 / jnp.sqrt(jnp.sqrt(cls_num))
        self.m_list = m_list * (max_m / jnp.max(m_list))
        self.frequency_list = jnp.log(jnp.sum(cls_num)) - jnp.log(cls_num)
        # TODO(synk): torch.distributions.dirichlet.Dirichlet sampler is never
        # used in forward(); not ported.
        self.T = 1000
        self.tau = float(tau)
        self._cache = {}

    def _get_call(self, E, B, C, logit_dtype, w_dtype, x_dtype):
        """Build the pallas_call callable once per (shape, dtype) signature.

        epoch/T arrives as an SMEM scalar, so the compiled kernel is reused
        across epochs (no per-epoch re-trace / recompile).
        """
        key = (E, B, C, str(logit_dtype), str(w_dtype), str(x_dtype))
        fn = self._cache.get(key)
        if fn is None:
            kernel = functools.partial(
                _tlc_kernel,
                tau=self.tau,
                lgamma_c=float(math.lgamma(C)),
                inv_b=1.0 / float(B))
            # No grid: the whole (E,B,C) problem is a few KB and lives in
            # VMEM; experts are vectorized inside the kernel.
            fn = pl.pallas_call(
                kernel,
                in_specs=[
                    pl.BlockSpec(memory_space=pltpu.MemorySpace.SMEM),  # epoch/T
                    pl.BlockSpec(memory_space=pltpu.MemorySpace.VMEM),  # y
                    pl.BlockSpec(memory_space=pltpu.MemorySpace.VMEM),  # x
                    pl.BlockSpec(memory_space=pltpu.MemorySpace.VMEM),  # logits
                    pl.BlockSpec(memory_space=pltpu.MemorySpace.VMEM),  # w
                ],
                out_specs=pl.BlockSpec(memory_space=pltpu.MemorySpace.VMEM),
                out_shape=jax.ShapeDtypeStruct((1, 1), jnp.float32),
            )
            self._cache[key] = fn
        return fn

    def __call__(self, x, y, epoch, extra_info):
        E = extra_info["num_expert"]
        logits = extra_info["logits"]
        w = extra_info["w"]
        # Prefer a pre-stacked (E,B,C) array (no extra HBM stack traffic);
        # still accept the torch-style per-expert list.
        if isinstance(logits, (list, tuple)):
            logits = jnp.stack([logits[i] for i in range(E)], axis=0)
        if isinstance(w, (list, tuple)):
            w = jnp.stack([w[i] for i in range(E)], axis=0)
        B, C = x.shape
        y2 = jnp.reshape(y, (B, 1)).astype(jnp.int32)
        w3 = jnp.reshape(w, (E, B, 1))
        eot = jnp.reshape(
            jnp.asarray(epoch, jnp.float32) / jnp.float32(self.T), (1,))

        fn = self._get_call(E, B, C, logits.dtype, w3.dtype, x.dtype)
        out = fn(eot, y2, x, logits, w3)
        return out[0, 0]


def _tlc_loss_ref(x, y, logits, w, epoch, T, tau):
    """Pure-JAX reference mirroring the PyTorch forward."""
    import jax.scipy.special as jsp
    loss = jnp.float32(0.0)
    E, B, C = logits.shape
    for i in range(E):
        lg = logits[i]
        alpha = jnp.exp(lg)
        S = alpha.sum(axis=1, keepdims=True)
        l = jnp.log(S)[:, 0] - jnp.take_along_axis(lg, y[:, None], axis=1)[:, 0]
        yi = jax.nn.one_hot(y, C, dtype=jnp.float32)
        alpha_t = yi + (1.0 - yi) * (alpha + 1.0)
        S_t = alpha_t.sum(axis=1, keepdims=True)
        kl = (jsp.gammaln(S_t) - jsp.gammaln(jnp.float32(C))
              - jsp.gammaln(alpha_t).sum(axis=1, keepdims=True)
              + ((alpha_t - 1.0) * (jsp.digamma(alpha_t) - jsp.digamma(S_t))
                 ).sum(axis=1, keepdims=True))
        l = l + (epoch / T) * kl[:, 0]
        log_p = jax.nn.log_softmax(lg, axis=1)
        q = jax.nn.softmax(x, axis=1)
        l = l - 0.01 * (q * (jnp.log(q) - log_p)).sum(axis=1)
        loss = loss + l.mean()
        wm = (w[i] > tau).astype(jnp.float32)
        wsum = wm.sum()
        loss = loss + jnp.where(wsum > 0,
                                (wm * l).sum() / jnp.maximum(wsum, 1.0), 0.0)
    return loss


if __name__ == "__main__":
    B, C, E = 8, 8, 3            # batch, classes, experts
    epoch = 5
    cls_num_list = [100, 80, 60, 50, 40, 30, 20, 10]

    key = jax.random.PRNGKey(0)
    kx, kl_, kw, ky = jax.random.split(key, 4)
    x = jax.random.normal(kx, (B, C), dtype=jnp.float32)            # mean logits
    logits = jax.random.normal(kl_, (E, B, C), dtype=jnp.float32)   # expert logits
    w = jax.random.uniform(kw, (E, B), dtype=jnp.float32)           # expert weights
    y = jax.random.randint(ky, (B,), 0, C, dtype=jnp.int32)         # labels

    crit = TLCLoss(cls_num_list, max_m=0.5, tau=0.5)
    # Keep per-expert tensors as one stacked array upstream (no jnp.stack /
    # astype HBM round-trip in the wrapper).
    extra_info = {"num_expert": E, "logits": logits, "w": w}

    loss = crit(x, y, epoch, extra_info)
    loss = jax.block_until_ready(loss)

    # Second call with a different epoch reuses the cached compiled kernel
    # (epoch/T is a runtime SMEM scalar, not a traced constant).
    loss2 = jax.block_until_ready(crit(x, y, epoch + 1, extra_info))

    ref = jax.block_until_ready(
        _tlc_loss_ref(x, y, logits, w, epoch, crit.T, crit.tau))
    ref2 = jax.block_until_ready(
        _tlc_loss_ref(x, y, logits, w, epoch + 1, crit.T, crit.tau))
    assert jnp.allclose(loss, ref, rtol=1e-3, atol=1e-3), (loss, ref)
    assert jnp.allclose(loss2, ref2, rtol=1e-3, atol=1e-3), (loss2, ref2)

    print("KERNEL_OK")
</pallas_src>

<mosaic_0001>
module attributes {stable_mosaic.version = 11 : i64} {
  func.func @_tlc_kernel(%arg0: memref<1xf32, #tpu.memory_space<smem>>, %arg1: memref<8x1xi32, #tpu.memory_space<vmem>>, %arg2: memref<8x8xf32, #tpu.memory_space<vmem>>, %arg3: memref<3x8x8xf32, #tpu.memory_space<vmem>>, %arg4: memref<3x8x1xf32, #tpu.memory_space<vmem>>, %arg5: memref<1x1xf32, #tpu.memory_space<vmem>>) attributes {dimension_semantics = [], scalar_prefetch = 0 : i64, scratch_operands = 0 : i64, tpu.core_type = #tpu.core_type<tc>} {
    %c0 = arith.constant 0 : index
    %0 = memref.load %arg0[%c0] : memref<1xf32, #tpu.memory_space<smem>>
    %c0_0 = arith.constant 0 : index
    %c0_1 = arith.constant 0 : index
    %c0_2 = arith.constant 0 : index
    %1 = vector.load %arg3[%c0_0, %c0_1, %c0_2] : memref<3x8x8xf32, #tpu.memory_space<vmem>>, vector<3x8x8xf32>
    %c0_3 = arith.constant 0 : index
    %c0_4 = arith.constant 0 : index
    %c0_5 = arith.constant 0 : index
    %2 = vector.load %arg4[%c0_3, %c0_4, %c0_5] : memref<3x8x1xf32, #tpu.memory_space<vmem>>, vector<3x8x1xf32>
    %c0_6 = arith.constant 0 : index
    %c0_7 = arith.constant 0 : index
    %3 = vector.load %arg1[%c0_6, %c0_7] : memref<8x1xi32, #tpu.memory_space<vmem>>, vector<8x1xi32>
    %c0_8 = arith.constant 0 : index
    %c0_9 = arith.constant 0 : index
    %4 = vector.load %arg2[%c0_8, %c0_9] : memref<8x8xf32, #tpu.memory_space<vmem>>, vector<8x8xf32>
    %cst = arith.constant dense<0xFF800000> : vector<8xf32>
    %5 = vector.multi_reduction <maximumf>, %4, %cst [1] : vector<8x8xf32> to vector<8xf32>
    %6 = vector.shape_cast %5 : vector<8xf32> to vector<8x1xf32>
    %7 = vector.broadcast %6 : vector<8x1xf32> to vector<8x8xf32>
    %8 = arith.subf %4, %7 : vector<8x8xf32>
    %9 = math.exp %8 : vector<8x8xf32>
    %cst_10 = arith.constant dense<0.000000e+00> : vector<8xf32>
    %10 = vector.multi_reduction <add>, %9, %cst_10 [1] : vector<8x8xf32> to vector<8xf32>
    %11 = vector.shape_cast %10 : vector<8xf32> to vector<8x1xf32>
    %12 = vector.broadcast %11 : vector<8x1xf32> to vector<8x8xf32>
    %13 = arith.divf %9, %12 : vector<8x8xf32>
    %14 = vector.broadcast %6 : vector<8x1xf32> to vector<8x8xf32>
    %15 = arith.subf %4, %14 : vector<8x8xf32>
    %16 = math.log %11 : vector<8x1xf32>
    %17 = vector.broadcast %16 : vector<8x1xf32> to vector<8x8xf32>
    %18 = arith.subf %15, %17 : vector<8x8xf32>
    %19 = arith.mulf %13, %18 : vector<8x8xf32>
    %cst_11 = arith.constant dense<0.000000e+00> : vector<8xf32>
    %20 = vector.multi_reduction <add>, %19, %cst_11 [1] : vector<8x8xf32> to vector<8xf32>
    %21 = vector.shape_cast %20 : vector<8xf32> to vector<8x1xf32>
    %cst_12 = arith.constant dense<0xFF800000> : vector<3x8xf32>
    %22 = vector.multi_reduction <maximumf>, %1, %cst_12 [2] : vector<3x8x8xf32> to vector<3x8xf32>
    %23 = vector.shape_cast %22 : vector<3x8xf32> to vector<3x8x1xf32>
    %24 = vector.broadcast %23 : vector<3x8x1xf32> to vector<3x8x8xf32>
    %25 = arith.subf %1, %24 : vector<3x8x8xf32>
    %26 = math.exp %25 : vector<3x8x8xf32>
    %cst_13 = arith.constant dense<0.000000e+00> : vector<3x8xf32>
    %27 = vector.multi_reduction <add>, %26, %cst_13 [2] : vector<3x8x8xf32> to vector<3x8xf32>
    %28 = vector.shape_cast %27 : vector<3x8xf32> to vector<3x8x1xf32>
    %29 = math.log %28 : vector<3x8x1xf32>
    %30 = arith.addf %23, %29 : vector<3x8x1xf32>
    %31 = math.exp %23 : vector<3x8x1xf32>
    %32 = vector.broadcast %31 : vector<3x8x1xf32> to vector<3x8x8xf32>
    %33 = arith.mulf %26, %32 : vector<3x8x8xf32>
    %34 = arith.mulf %28, %31 : vector<3x8x1xf32>
    %35 = tpu.iota {dimensions = array<i32: 1>} : vector<8x8xi32>
    %36 = vector.broadcast %3 : vector<8x1xi32> to vector<8x8xi32>
    %37 = arith.cmpi eq, %35, %36 : vector<8x8xi32>
    %38 = arith.extui %37 : vector<8x8xi1> to vector<8x8xi32>
    %39 = arith.sitofp %38 : vector<8x8xi32> to vector<8x8xf32>
    %40 = vector.shape_cast %39 : vector<8x8xf32> to vector<1x8x8xf32>
    %41 = vector.broadcast %40 : vector<1x8x8xf32> to vector<3x8x8xf32>
    %42 = arith.mulf %41, %1 : vector<3x8x8xf32>
    %cst_14 = arith.constant dense<0.000000e+00> : vector<3x8xf32>
    %43 = vector.multi_reduction <add>, %42, %cst_14 [2] : vector<3x8x8xf32> to vector<3x8xf32>
    %44 = vector.shape_cast %43 : vector<3x8xf32> to vector<3x8x1xf32>
    %45 = arith.subf %30, %44 : vector<3x8x1xf32>
    %cst_15 = arith.constant 1.000000e+00 : f32
    %46 = vector.broadcast %cst_15 : f32 to vector<3x8x8xf32>
    %47 = arith.addf %33, %46 : vector<3x8x8xf32>
    %48 = vector.broadcast %40 : vector<1x8x8xf32> to vector<3x8x8xf32>
    %49 = arith.mulf %48, %33 : vector<3x8x8xf32>
    %50 = arith.subf %47, %49 : vector<3x8x8xf32>
    %cst_16 = arith.constant 8.000000e+00 : f32
    %51 = vector.broadcast %cst_16 : f32 to vector<3x8x1xf32>
    %52 = arith.addf %34, %51 : vector<3x8x1xf32>
    %53 = math.exp %44 : vector<3x8x1xf32>
    %54 = arith.subf %52, %53 : vector<3x8x1xf32>
    %cst_17 = arith.constant 1.000000e+00 : f32
    %55 = vector.broadcast %cst_17 : f32 to vector<3x8x8xf32>
    %56 = arith.addf %50, %55 : vector<3x8x8xf32>
    %cst_18 = arith.constant 2.000000e+00 : f32
    %57 = vector.broadcast %cst_18 : f32 to vector<3x8x8xf32>
    %58 = arith.addf %50, %57 : vector<3x8x8xf32>
    %cst_19 = arith.constant 3.000000e+00 : f32
    %59 = vector.broadcast %cst_19 : f32 to vector<3x8x8xf32>
    %60 = arith.addf %50, %59 : vector<3x8x8xf32>
    %cst_20 = arith.constant 4.000000e+00 : f32
    %61 = vector.broadcast %cst_20 : f32 to vector<3x8x8xf32>
    %62 = arith.addf %50, %61 : vector<3x8x8xf32>
    %cst_21 = arith.constant 5.000000e+00 : f32
    %63 = vector.broadcast %cst_21 : f32 to vector<3x8x8xf32>
    %64 = arith.addf %50, %63 : vector<3x8x8xf32>
    %cst_22 = arith.constant 6.000000e+00 : f32
    %65 = vector.broadcast %cst_22 : f32 to vector<3x8x8xf32>
    %66 = arith.addf %50, %65 : vector<3x8x8xf32>
    %67 = arith.mulf %50, %56 : vector<3x8x8xf32>
    %68 = arith.mulf %58, %60 : vector<3x8x8xf32>
    %69 = arith.mulf %62, %64 : vector<3x8x8xf32>
    %70 = arith.mulf %67, %68 : vector<3x8x8xf32>
    %71 = arith.mulf %70, %69 : vector<3x8x8xf32>
    %72 = math.log %70 : vector<3x8x8xf32>
    %73 = math.log %69 : vector<3x8x8xf32>
    %74 = arith.addf %72, %73 : vector<3x8x8xf32>
    %75 = math.log %66 : vector<3x8x8xf32>
    %76 = tpu.reciprocal %66 {approx = true} : vector<3x8x8xf32> -> vector<3x8x8xf32>
    %77 = arith.mulf %76, %76 : vector<3x8x8xf32>
    %cst_23 = arith.constant 7.93650805E-4 : f32
    %78 = vector.broadcast %cst_23 : f32 to vector<3x8x8xf32>
    %79 = arith.mulf %77, %78 : vector<3x8x8xf32>
    %cst_24 = arith.constant 0.00277777785 : f32
    %80 = vector.broadcast %cst_24 : f32 to vector<3x8x8xf32>
    %81 = arith.subf %80, %79 : vector<3x8x8xf32>
    %82 = arith.mulf %77, %81 : vector<3x8x8xf32>
    %cst_25 = arith.constant 0.0833333358 : f32
    %83 = vector.broadcast %cst_25 : f32 to vector<3x8x8xf32>
    %84 = arith.subf %83, %82 : vector<3x8x8xf32>
    %85 = arith.mulf %76, %84 : vector<3x8x8xf32>
    %cst_26 = arith.constant 5.000000e-01 : f32
    %86 = vector.broadcast %cst_26 : f32 to vector<3x8x8xf32>
    %87 = arith.subf %66, %86 : vector<3x8x8xf32>
    %88 = arith.mulf %87, %75 : vector<3x8x8xf32>
    %89 = arith.subf %88, %66 : vector<3x8x8xf32>
    %cst_27 = arith.constant 0.918938517 : f32
    %90 = vector.broadcast %cst_27 : f32 to vector<3x8x8xf32>
    %91 = arith.addf %89, %90 : vector<3x8x8xf32>
    %92 = arith.addf %91, %85 : vector<3x8x8xf32>
    %93 = arith.subf %92, %74 : vector<3x8x8xf32>
    %94 = arith.addf %50, %56 : vector<3x8x8xf32>
    %95 = arith.mulf %68, %69 : vector<3x8x8xf32>
    %96 = arith.mulf %94, %95 : vector<3x8x8xf32>
    %97 = arith.addf %58, %60 : vector<3x8x8xf32>
    %98 = arith.mulf %67, %69 : vector<3x8x8xf32>
    %99 = arith.mulf %97, %98 : vector<3x8x8xf32>
    %100 = arith.addf %96, %99 : vector<3x8x8xf32>
    %101 = arith.addf %62, %64 : vector<3x8x8xf32>
    %102 = arith.mulf %101, %70 : vector<3x8x8xf32>
    %103 = arith.addf %100, %102 : vector<3x8x8xf32>
    %104 = tpu.reciprocal %71 {approx = true} : vector<3x8x8xf32> -> vector<3x8x8xf32>
    %105 = arith.mulf %103, %104 : vector<3x8x8xf32>
    %cst_28 = arith.constant 0.0039682542 : f32
    %106 = vector.broadcast %cst_28 : f32 to vector<3x8x8xf32>
    %107 = arith.mulf %77, %106 : vector<3x8x8xf32>
    %cst_29 = arith.constant 0.00833333377 : f32
    %108 = vector.broadcast %cst_29 : f32 to vector<3x8x8xf32>
    %109 = arith.subf %108, %107 : vector<3x8x8xf32>
    %110 = arith.mulf %77, %109 : vector<3x8x8xf32>
    %cst_30 = arith.constant 0.0833333358 : f32
    %111 = vector.broadcast %cst_30 : f32 to vector<3x8x8xf32>
    %112 = arith.subf %111, %110 : vector<3x8x8xf32>
    %113 = arith.mulf %77, %112 : vector<3x8x8xf32>
    %cst_31 = arith.constant 5.000000e-01 : f32
    %114 = vector.broadcast %cst_31 : f32 to vector<3x8x8xf32>
    %115 = arith.mulf %114, %76 : vector<3x8x8xf32>
    %116 = arith.subf %75, %115 : vector<3x8x8xf32>
    %117 = arith.subf %116, %113 : vector<3x8x8xf32>
    %118 = arith.subf %117, %105 : vector<3x8x8xf32>
    %cst_32 = arith.constant 1.000000e+00 : f32
    %119 = vector.broadcast %cst_32 : f32 to vector<3x8x1xf32>
    %120 = arith.addf %54, %119 : vector<3x8x1xf32>
    %cst_33 = arith.constant 2.000000e+00 : f32
    %121 = vector.broadcast %cst_33 : f32 to vector<3x8x1xf32>
    %122 = arith.addf %54, %121 : vector<3x8x1xf32>
    %cst_34 = arith.constant 3.000000e+00 : f32
    %123 = vector.broadcast %cst_34 : f32 to vector<3x8x1xf32>
    %124 = arith.addf %54, %123 : vector<3x8x1xf32>
    %cst_35 = arith.constant 4.000000e+00 : f32
    %125 = vector.broadcast %cst_35 : f32 to vector<3x8x1xf32>
    %126 = arith.addf %54, %125 : vector<3x8x1xf32>
    %cst_36 = arith.constant 5.000000e+00 : f32
    %127 = vector.broadcast %cst_36 : f32 to vector<3x8x1xf32>
    %128 = arith.addf %54, %127 : vector<3x8x1xf32>
    %cst_37 = arith.constant 6.000000e+00 : f32
    %129 = vector.broadcast %cst_37 : f32 to vector<3x8x1xf32>
    %130 = arith.addf %54, %129 : vector<3x8x1xf32>
    %131 = arith.mulf %54, %120 : vector<3x8x1xf32>
    %132 = arith.mulf %122, %124 : vector<3x8x1xf32>
    %133 = arith.mulf %126, %128 : vector<3x8x1xf32>
    %134 = arith.mulf %131, %132 : vector<3x8x1xf32>
    %135 = arith.mulf %134, %133 : vector<3x8x1xf32>
    %136 = math.log %134 : vector<3x8x1xf32>
    %137 = math.log %133 : vector<3x8x1xf32>
    %138 = arith.addf %136, %137 : vector<3x8x1xf32>
    %139 = math.log %130 : vector<3x8x1xf32>
    %140 = tpu.reciprocal %130 {approx = true} : vector<3x8x1xf32> -> vector<3x8x1xf32>
    %141 = arith.mulf %140, %140 : vector<3x8x1xf32>
    %cst_38 = arith.constant 7.93650805E-4 : f32
    %142 = vector.broadcast %cst_38 : f32 to vector<3x8x1xf32>
    %143 = arith.mulf %141, %142 : vector<3x8x1xf32>
    %cst_39 = arith.constant 0.00277777785 : f32
    %144 = vector.broadcast %cst_39 : f32 to vector<3x8x1xf32>
    %145 = arith.subf %144, %143 : vector<3x8x1xf32>
    %146 = arith.mulf %141, %145 : vector<3x8x1xf32>
    %cst_40 = arith.constant 0.0833333358 : f32
    %147 = vector.broadcast %cst_40 : f32 to vector<3x8x1xf32>
    %148 = arith.subf %147, %146 : vector<3x8x1xf32>
    %149 = arith.mulf %140, %148 : vector<3x8x1xf32>
    %cst_41 = arith.constant 5.000000e-01 : f32
    %150 = vector.broadcast %cst_41 : f32 to vector<3x8x1xf32>
    %151 = arith.subf %130, %150 : vector<3x8x1xf32>
    %152 = arith.mulf %151, %139 : vector<3x8x1xf32>
    %153 = arith.subf %152, %130 : vector<3x8x1xf32>
    %cst_42 = arith.constant 0.918938517 : f32
    %154 = vector.broadcast %cst_42 : f32 to vector<3x8x1xf32>
    %155 = arith.addf %153, %154 : vector<3x8x1xf32>
    %156 = arith.addf %155, %149 : vector<3x8x1xf32>
    %157 = arith.subf %156, %138 : vector<3x8x1xf32>
    %158 = arith.addf %54, %120 : vector<3x8x1xf32>
    %159 = arith.mulf %132, %133 : vector<3x8x1xf32>
    %160 = arith.mulf %158, %159 : vector<3x8x1xf32>
    %161 = arith.addf %122, %124 : vector<3x8x1xf32>
    %162 = arith.mulf %131, %133 : vector<3x8x1xf32>
    %163 = arith.mulf %161, %162 : vector<3x8x1xf32>
    %164 = arith.addf %160, %163 : vector<3x8x1xf32>
    %165 = arith.addf %126, %128 : vector<3x8x1xf32>
    %166 = arith.mulf %165, %134 : vector<3x8x1xf32>
    %167 = arith.addf %164, %166 : vector<3x8x1xf32>
    %168 = tpu.reciprocal %135 {approx = true} : vector<3x8x1xf32> -> vector<3x8x1xf32>
    %169 = arith.mulf %167, %168 : vector<3x8x1xf32>
    %cst_43 = arith.constant 0.0039682542 : f32
    %170 = vector.broadcast %cst_43 : f32 to vector<3x8x1xf32>
    %171 = arith.mulf %141, %170 : vector<3x8x1xf32>
    %cst_44 = arith.constant 0.00833333377 : f32
    %172 = vector.broadcast %cst_44 : f32 to vector<3x8x1xf32>
    %173 = arith.subf %172, %171 : vector<3x8x1xf32>
    %174 = arith.mulf %141, %173 : vector<3x8x1xf32>
    %cst_45 = arith.constant 0.0833333358 : f32
    %175 = vector.broadcast %cst_45 : f32 to vector<3x8x1xf32>
    %176 = arith.subf %175, %174 : vector<3x8x1xf32>
    %177 = arith.mulf %141, %176 : vector<3x8x1xf32>
    %cst_46 = arith.constant 5.000000e-01 : f32
    %178 = vector.broadcast %cst_46 : f32 to vector<3x8x1xf32>
    %179 = arith.mulf %178, %140 : vector<3x8x1xf32>
    %180 = arith.subf %139, %179 : vector<3x8x1xf32>
    %181 = arith.subf %180, %177 : vector<3x8x1xf32>
    %182 = arith.subf %181, %169 : vector<3x8x1xf32>
    %cst_47 = arith.constant 1.000000e+00 : f32
    %183 = vector.broadcast %cst_47 : f32 to vector<3x8x8xf32>
    %184 = arith.subf %50, %183 : vector<3x8x8xf32>
    %185 = arith.mulf %184, %118 : vector<3x8x8xf32>
    %186 = arith.subf %185, %93 : vector<3x8x8xf32>
    %cst_48 = arith.constant dense<0.000000e+00> : vector<3x8xf32>
    %187 = vector.multi_reduction <add>, %186, %cst_48 [2] : vector<3x8x8xf32> to vector<3x8xf32>
    %188 = vector.shape_cast %187 : vector<3x8xf32> to vector<3x8x1xf32>
    %cst_49 = arith.constant 8.52516174 : f32
    %189 = vector.broadcast %cst_49 : f32 to vector<3x8x1xf32>
    %190 = arith.subf %157, %189 : vector<3x8x1xf32>
    %191 = arith.addf %190, %188 : vector<3x8x1xf32>
    %cst_50 = arith.constant 8.000000e+00 : f32
    %192 = vector.broadcast %cst_50 : f32 to vector<3x8x1xf32>
    %193 = arith.subf %54, %192 : vector<3x8x1xf32>
    %194 = arith.mulf %193, %182 : vector<3x8x1xf32>
    %195 = arith.subf %191, %194 : vector<3x8x1xf32>
    %196 = vector.broadcast %0 : f32 to vector<3x8x1xf32>
    %197 = arith.mulf %196, %195 : vector<3x8x1xf32>
    %198 = arith.addf %45, %197 : vector<3x8x1xf32>
    %199 = vector.shape_cast %13 : vector<8x8xf32> to vector<1x8x8xf32>
    %200 = vector.broadcast %199 : vector<1x8x8xf32> to vector<3x8x8xf32>
    %201 = arith.mulf %200, %1 : vector<3x8x8xf32>
    %cst_51 = arith.constant dense<0.000000e+00> : vector<3x8xf32>
    %202 = vector.multi_reduction <add>, %201, %cst_51 [2] : vector<3x8x8xf32> to vector<3x8xf32>
    %203 = vector.shape_cast %202 : vector<3x8xf32> to vector<3x8x1xf32>
    %204 = arith.subf %203, %30 : vector<3x8x1xf32>
    %205 = vector.shape_cast %21 : vector<8x1xf32> to vector<1x8x1xf32>
    %206 = vector.broadcast %205 : vector<1x8x1xf32> to vector<3x8x1xf32>
    %207 = arith.subf %206, %204 : vector<3x8x1xf32>
    %cst_52 = arith.constant 0.00999999977 : f32
    %208 = vector.broadcast %cst_52 : f32 to vector<3x8x1xf32>
    %209 = arith.mulf %208, %207 : vector<3x8x1xf32>
    %210 = arith.subf %198, %209 : vector<3x8x1xf32>
    %cst_53 = arith.constant dense<0.000000e+00> : vector<3x1xf32>
    %211 = vector.multi_reduction <add>, %210, %cst_53 [1] : vector<3x8x1xf32> to vector<3x1xf32>
    %212 = vector.shape_cast %211 : vector<3x1xf32> to vector<3x1x1xf32>
    %cst_54 = arith.constant 1.250000e-01 : f32
    %213 = vector.broadcast %cst_54 : f32 to vector<3x1x1xf32>
    %214 = arith.mulf %212, %213 : vector<3x1x1xf32>
    %cst_55 = arith.constant 5.000000e-01 : f32
    %215 = vector.broadcast %cst_55 : f32 to vector<3x8x1xf32>
    %216 = arith.cmpf ogt, %2, %215 : vector<3x8x1xf32>
    %217 = arith.extui %216 : vector<3x8x1xi1> to vector<3x8x1xi32>
    %218 = arith.sitofp %217 : vector<3x8x1xi32> to vector<3x8x1xf32>
    %cst_56 = arith.constant dense<0.000000e+00> : vector<3x1xf32>
    %219 = vector.multi_reduction <add>, %218, %cst_56 [1] : vector<3x8x1xf32> to vector<3x1xf32>
    %220 = vector.shape_cast %219 : vector<3x1xf32> to vector<3x1x1xf32>
    %221 = arith.mulf %218, %210 : vector<3x8x1xf32>
    %cst_57 = arith.constant dense<0.000000e+00> : vector<3x1xf32>
    %222 = vector.multi_reduction <add>, %221, %cst_57 [1] : vector<3x8x1xf32> to vector<3x1xf32>
    %223 = vector.shape_cast %222 : vector<3x1xf32> to vector<3x1x1xf32>
    %cst_58 = arith.constant 1.000000e+00 : f32
    %224 = vector.broadcast %cst_58 : f32 to vector<3x1x1xf32>
    %225 = arith.maximumf %220, %224 : vector<3x1x1xf32>
    %226 = arith.divf %223, %225 : vector<3x1x1xf32>
    %cst_59 = arith.constant 0.000000e+00 : f32
    %227 = vector.broadcast %cst_59 : f32 to vector<3x1x1xf32>
    %228 = arith.cmpf ogt, %220, %227 : vector<3x1x1xf32>
    %cst_60 = arith.constant 0.000000e+00 : f32
    %229 = vector.broadcast %cst_60 : f32 to vector<3x1x1xf32>
    %230 = arith.select %228, %226, %229 : vector<3x1x1xi1>, vector<3x1x1xf32>
    %231 = arith.addf %214, %230 : vector<3x1x1xf32>
    %232 = vector.shape_cast %231 : vector<3x1x1xf32> to vector<1x3x1x1xf32>
    %cst_61 = arith.constant dense<0.000000e+00> : vector<1xf32>
    %233 = vector.multi_reduction <add>, %232, %cst_61 [1, 2, 3] : vector<1x3x1x1xf32> to vector<1xf32>
    %234 = vector.shape_cast %233 : vector<1xf32> to vector<1x1x1x1xf32>
    %235 = vector.extract %234[0, 0, 0, 0] : f32 from vector<1x1x1x1xf32>
    %236 = vector.broadcast %235 : f32 to vector<1x1xf32>
    %c0_62 = arith.constant 0 : index
    %c0_63 = arith.constant 0 : index
    %237 = vector.load %arg5[%c0_62, %c0_63] : memref<1x1xf32, #tpu.memory_space<vmem>>, vector<1x1xf32>
    tpu.vector_store %arg5[%c0_62, %c0_63], %236 {strides = array<i32>} : memref<1x1xf32, #tpu.memory_space<vmem>>, vector<1x1xf32>,
    return
  }
}

</mosaic_0001>

<bundles_post_ra>
// kernel: tpu_custom_call.1
= control target key start
LH: loop header
LB: loop body
LE: loop exit
PB: predicated region body
PF: predicated region fallthrough
CT: control target
= control target key end

     0   :  { %vm31_vm0 = vcmask 64512   ;;  %v788_v6 = vmov 0   ;;  %s1246_s0 = inlined_call_operand.<no memory space> [shape: f32[1], index: 0, kind: input, shape index: {}]   ;;  %s1247_s1 = inlined_call_operand.vmem [shape: s32[8,1], index: 1, kind: input, shape index: {}]   ;;  %s1248_s2 = inlined_call_operand.vmem [shape: f32[8,8], index: 2, kind: input, shape index: {}]   ;;  %s1249_s3 = inlined_call_operand.vmem [shape: f32[3,8,8], index: 3, kind: input, shape index: {}]   ;;  %s1250_s4 = inlined_call_operand.vmem [shape: f32[3,8,1], index: 4, kind: input, shape index: {}]   ;;  %s1251_s5 = inlined_call_operand.hbm [shape: f32[1,1], index: 5, kind: output, shape index: {}]  }
   0x1   :  { %v30_v0 = vld [vmem:[%s1248_s2] sm:$0xff]  ;;  %v832_v2 = vld [vmem:[%s1249_s3 + $0x8] sm:$0xff]  ;;  %v840_v5 = vld [vmem:[%s1249_s3 + $0x10] sm:$0xff]  ;;  %667 = vset.pattern.permute.xlu0 %v788_v6 }
   0x2   :  { %v827_v1 = vld [vmem:[%s1249_s3] sm:$0xff]  ;;  %v32_v3 = vsel %vm31_vm0, %v30_v0, -inf  ;;  %v53_v4 = vsel %vm31_vm0, %v832_v2, -inf }
   0x3   :  { %33 = vmax.xlane.f32.xlu0 %v32_v3  ;;  %54 = vmax.xlane.f32.xlu1 %v53_v4 }
   0x4   :  { %11 = vsyncpa [#allocation4], 0  ;;  %v50_v7 = vsel %vm31_vm0, %v827_v1, -inf  ;;  %v56_v8 = vsel %vm31_vm0, %v840_v5, -inf  ;;  %v29_v9 = vld [vmem:[%s1247_s1] sm:$0xff]  ;;  %v98_v18 = vlaneseq  ;;  %v1252_v29 = vmov 0.0  }
   0x5   :  { %vm548_vm5 = vcmask 7168   ;;  %vm612_vm8 = vcmask 0  }
   0x6   :  { %v99_v26 = vand.u32 127, %v98_v18 }
   0x7   :  { %51 = vmax.xlane.f32.xlu0 %v50_v7  ;;  %57 = vmax.xlane.f32.xlu1 %v56_v8 }
  0x1d   :  { %101 = vperm.xlu0 %667, %v29_v9  }
  0x90   :  { %v34_v10 = vpop.xlane.xlu0 %33  ;;  %v849_v11 = vpop.xlane.xlu1 %54 }
  0x91   :  { %1262 = vst [vmem:[#allocation6_spill] sm:$0xff] %v849_v11  ;;  %v851_v12 = vsub.f32 %v30_v0, %v34_v10  ;;  %v60_v13 = vsub.f32 %v832_v2, %v849_v11  ;;  %v88_v14 = vmul.f32 1.442695, %v849_v11 }
  0x93   :  { %v36_v15 = vmul.f32 1.442695, %v851_v12  ;;  %v64_v16 = vmul.f32 1.442695, %v60_v13  ;;  %668 = vpow2.f32 %v88_v14 }
  0x94   :  { %v857_v17 = vpop.xlane.xlu0 %51  ;;  %v859_v19 = vpop.xlane.xlu1 %57 }
  0x95   :  { %1263 = vst [vmem:[#allocation7_spill] sm:$0xff] %v859_v19  ;;  %670 = vpow2.f32 %v36_v15  ;;  %v59_v20 = vsub.f32 %v827_v1, %v857_v17  ;;  %v86_v21 = vmul.f32 1.442695, %v857_v17  ;;  %v61_v22 = vsub.f32 %v840_v5, %v859_v19 }
  0x96   :  { %672 = vpow2.f32 %v64_v16  ;;  %v90_v23 = vmul.f32 1.442695, %v859_v19 }
  0x97   :  { %v62_v24 = vmul.f32 1.442695, %v59_v20  ;;  %674 = vpow2.f32 %v86_v21  ;;  %v66_v25 = vmul.f32 1.442695, %v61_v22 }
  0x98   :  { %676 = vpow2.f32 %v90_v23 }
  0x99   :  { %678 = vpow2.f32 %v62_v24 }
  0x9a   :  { %680 = vpow2.f32 %v66_v25 }
  0x9c   :  { %v102_v27 = vpop.permute.xlu0 %101 }
  0x9d   :  { %vm103_vm1 = vcmp.eq.s32.totalorder %v99_v26, %v102_v27  ;;  %v867_v28 = vpop.eup %668 }
  0x9e   :  { %v643_v30 = vsel %vm103_vm1, 1.0, %v1252_v29 }
  0x9f   :  { %v870_v31 = vpop.eup %670  ;;  %v106_v32 = vmul.f32 %v643_v30, %v827_v1  ;;  %v107_v39 = vmul.f32 %v643_v30, %v832_v2  ;;  %v108_v46 = vmul.f32 %v643_v30, %v840_v5 }
  0xa0   :  { %v673_v33 = vpop.eup %672  ;;  %v38_v34 = vsel %vm31_vm0, %v870_v31, 0.0 }
  0xa1   :  { %v875_v35 = vpop.eup %674  ;;  %39 = vadd.xlane.f32.xlu1 %v38_v34  ;;  %v93_v36 = vmul.f32 %v673_v33, %v867_v28  ;;  %v109_v38 = vsel %vm31_vm0, %v106_v32, 0.0  ;;  %v112_v50 = vsel %vm31_vm0, %v107_v39, 0.0  ;;  %v115_v57 = vsel %vm31_vm0, %v108_v46, 0.0 }
  0xa2   :  { %v878_v37 = vpop.eup %676  ;;  %v71_v58 = vsel %vm31_vm0, %v673_v33, 0.0 }
  0xa3   :  { %v679_v40 = vpop.eup %678  ;;  %v122_v41 = vadd.f32 1.0, %v93_v36  ;;  %v125_v42 = vmul.f32 %v643_v30, %v93_v36 }
  0xa4   :  { %v681_v43 = vpop.eup %680  ;;  %v92_v44 = vmul.f32 %v679_v40, %v875_v35  ;;  %v68_v10 = vsel %vm31_vm0, %v679_v40, 0.0 }
  0xa5   :  { %110 = vadd.xlane.f32.xlu1 %v109_v38  ;;  %v94_v45 = vmul.f32 %v681_v43, %v878_v37  ;;  %v885_v49 = vsub.f32 %v122_v41, %v125_v42  ;;  %v74_v38 = vsel %vm31_vm0, %v681_v43, 0.0 }
  0xa6   :  { %v121_v47 = vadd.f32 1.0, %v92_v44  ;;  %v124_v48 = vmul.f32 %v643_v30, %v92_v44 }
  0xa7   :  { %v143_v52 = vadd.f32 1.0, %v885_v49  ;;  %v146_v53 = vadd.f32 2.0, %v885_v49  ;;  %v149_v54 = vadd.f32 3.0, %v885_v49  ;;  %v123_v55 = vadd.f32 1.0, %v94_v45 }
  0xa8   :  { %v888_v51 = vsub.f32 %v121_v47, %v124_v48  ;;  %v126_v56 = vmul.f32 %v643_v30, %v94_v45  ;;  %v152_v3 = vadd.f32 4.0, %v885_v49  ;;  %v155_v4 = vadd.f32 5.0, %v885_v49 }
  0xa9   :  { %113 = vadd.xlane.f32.xlu1 %v112_v50  ;;  %v161_v8 = vmul.f32 %v143_v52, %v885_v49  ;;  %v164_v9 = vmul.f32 %v149_v54, %v146_v53  ;;  %v914_v22 = vadd.f32 6.0, %v885_v49  ;;  %v236_v26 = vadd.f32 %v143_v52, %v885_v49 }
  0xaa   :  { %v142_v59 = vadd.f32 1.0, %v888_v51  ;;  %v145_v60 = vadd.f32 2.0, %v888_v51  ;;  %v148_v61 = vadd.f32 3.0, %v888_v51  ;;  %v151_v62 = vadd.f32 4.0, %v888_v51 }
  0xab   :  { %v154_v63 = vadd.f32 5.0, %v888_v51  ;;  %v901_v0 = vadd.f32 6.0, %v888_v51  ;;  %v910_v15 = vsub.f32 %v123_v55, %v126_v56  ;;  %v167_v23 = vmul.f32 %v155_v4, %v152_v3 }
  0xac   :  { %v160_v6 = vmul.f32 %v142_v59, %v888_v51  ;;  %v163_v7 = vmul.f32 %v148_v61, %v145_v60  ;;  %v235_v14 = vadd.f32 %v142_v59, %v888_v51  ;;  %v244_v18 = vadd.f32 %v148_v61, %v145_v60 }
  0xad   :  { %116 = vadd.xlane.f32.xlu1 %v115_v57  ;;  %v166_v13 = vmul.f32 %v154_v63, %v151_v62  ;;  %682 = vlog2.f32 %v901_v0  ;;  %v170_v25 = vmul.f32 %v164_v9, %v161_v8  ;;  %v256_v30 = vadd.f32 %v154_v63, %v151_v62 }
  0xae   :  { %v169_v16 = vmul.f32 %v163_v7, %v160_v6  ;;  %684 = vrcp.f32 %v901_v0  ;;  %v239_v32 = vmul.f32 %v167_v23, %v164_v9  ;;  %v245_v34 = vadd.f32 %v149_v54, %v146_v53 }
  0xaf   :  { %v238_v20 = vmul.f32 %v166_v13, %v163_v7  ;;  %v247_v21 = vmul.f32 %v166_v13, %v160_v6  ;;  %686 = vlog2.f32 %v166_v13  ;;  %v248_v36 = vmul.f32 %v167_v23, %v161_v8 }
  0xb0   :  { %v172_v24 = vmul.f32 %v169_v16, %v166_v13  ;;  %688 = vlog2.f32 %v169_v16  ;;  %v257_v39 = vadd.f32 %v155_v4, %v152_v3  ;;  %v242_v40 = vmul.f32 %v239_v32, %v236_v26 }
  0xb1   :  { %69 = vadd.xlane.f32.xlu1 %v68_v10  ;;  %v241_v27 = vmul.f32 %v238_v20, %v235_v14  ;;  %v250_v33 = vmul.f32 %v247_v21, %v244_v18  ;;  %690 = vlog2.f32 %v170_v25  ;;  %v251_v41 = vmul.f32 %v248_v36, %v245_v34 }
  0xb2   :  { %692 = vrcp.f32 %v172_v24  ;;  %v144_v42 = vadd.f32 1.0, %v910_v15  ;;  %v644_v44 = vadd.f32 -0.5, %v901_v0  ;;  %v147_v45 = vadd.f32 2.0, %v910_v15 }
  0xb3   :  { %694 = vlog2.f32 %v914_v22  ;;  %v150_v46 = vadd.f32 3.0, %v910_v15  ;;  %v253_v47 = vadd.f32 %v250_v33, %v241_v27  ;;  %v259_v48 = vmul.f32 %v256_v30, %v169_v16 }
  0xb4   :  { %696 = vrcp.f32 %v914_v22  ;;  %v173_v43 = vmul.f32 %v170_v25, %v167_v23  ;;  %v260_v52 = vmul.f32 %v257_v39, %v170_v25  ;;  %v925_v53 = vadd.f32 4.0, %v910_v15 }
  0xb5   :  { %72 = vadd.xlane.f32.xlu1 %v71_v58  ;;  %698 = vlog2.f32 %v167_v23  ;;  %v928_v54 = vadd.f32 5.0, %v910_v15  ;;  %v931_v55 = vadd.f32 6.0, %v910_v15  ;;  %v254_v58 = vadd.f32 %v251_v41, %v242_v40 }
  0xb6   :  { %v162_v59 = vmul.f32 %v144_v42, %v910_v15  ;;  %v165_v60 = vmul.f32 %v150_v46, %v147_v45  ;;  %v937_v62 = vadd.f32 -1.0, %v888_v51  ;;  %v645_v63 = vadd.f32 -0.5, %v914_v22 }
  0xb7   :  { %v683_v50 = vpop.eup %682  ;;  %700 = vlog2.f32 %v931_v55  ;;  %v262_v6 = vadd.f32 %v259_v48, %v253_v47  ;;  %v168_v13 = vmul.f32 %v928_v54, %v925_v53  ;;  %v237_v14 = vadd.f32 %v144_v42, %v910_v15 }
  0xb8   :  { %v685_v56 = vpop.eup %684  ;;  %v933_v57 = vmul.f32 0.6931472, %v683_v50  ;;  %702 = vrcp.f32 %v173_v43  ;;  %v946_v18 = vadd.f32 %v260_v52, %v254_v58  ;;  %v948_v20 = vmul.f32 %v165_v60, %v162_v59 }
  0xb9   :  { %75 = vadd.xlane.f32.xlu1 %v74_v38  ;;  %v199_v61 = vmul.f32 %v685_v56, %v685_v56  ;;  %v687_v3 = vpop.eup %686  ;;  %v286_v7 = vmul.f32 0.5, %v685_v56  ;;  %v246_v21 = vadd.f32 %v150_v46, %v147_v45  ;;  %704 = vlog2.f32 %v168_v13 }
  0xba   :  { %v220_v4 = vmul.f32 %v644_v44, %v933_v57  ;;  %v689_v8 = vpop.eup %688  ;;  %v182_v24 = vmul.f32 0.6931472, %v687_v3  ;;  %706 = vrcp.f32 %v931_v55  ;;  %v646_v33 = vadd.f32 -0.5, %v931_v55 }
  0xbb   :  { %v202_v9 = vmul.f32 0.0007936508, %v199_v61  ;;  %v271_v10 = vmul.f32 0.003968254, %v199_v61  ;;  %v691_v51 = vpop.eup %690  ;;  %v176_v30 = vmul.f32 0.6931472, %v689_v8  ;;  %v289_v32 = vsub.f32 %v933_v57, %v286_v7 }
  0xbc   :  { %v223_v16 = vsub.f32 %v220_v4, %v901_v0  ;;  %v693_v23 = vpop.eup %692  ;;  %v178_v38 = vmul.f32 0.6931472, %v691_v51  ;;  %v174_v44 = vmul.f32 %v948_v20, %v168_v13  ;;  %708 = vlog2.f32 %v948_v20 }
  0xbd   :  { %v205_v25 = vsub.f32 0.0027777778, %v202_v9  ;;  %v274_v26 = vsub.f32 0.008333334, %v271_v10  ;;  %v695_v27 = vpop.eup %694  ;;  %v240_v48 = vmul.f32 %v168_v13, %v165_v60  ;;  %v249_v57 = vmul.f32 %v168_v13, %v162_v59 }
  0xbe   :  { %v697_v34 = vpop.eup %696  ;;  %v193_v39 = vmul.f32 0.6931472, %v695_v27  ;;  %v226_v41 = vadd.f32 0.9189385, %v223_v16  ;;  %v187_v3 = vadd.f32 %v182_v24, %v176_v30  ;;  %v268_v7 = vmul.f32 %v693_v23, %v262_v6 }
  0xbf   :  { %v208_v0 = vmul.f32 %v205_v25, %v199_v61  ;;  %v277_v36 = vmul.f32 %v274_v26, %v199_v61  ;;  %v699_v40 = vpop.eup %698  ;;  %v200_v42 = vmul.f32 %v697_v34, %v697_v34  ;;  %v287_v52 = vmul.f32 0.5, %v697_v34 }
  0xc0   :  { %v221_v47 = vmul.f32 %v645_v63, %v193_v39  ;;  %v243_v63 = vmul.f32 %v240_v48, %v237_v14  ;;  %v252_v19 = vmul.f32 %v249_v57, %v246_v21  ;;  %710 = vrcp.f32 %v174_v44 }
  0xc1   :  { %v211_v45 = vsub.f32 0.083333336, %v208_v0  ;;  %v280_v46 = vsub.f32 0.083333336, %v277_v36  ;;  %v203_v43 = vmul.f32 0.0007936508, %v200_v42  ;;  %v701_v58 = vpop.eup %700  ;;  %v290_v29 = vsub.f32 %v193_v39, %v287_v52 }
  0xc2   :  { %v272_v50 = vmul.f32 0.003968254, %v200_v42  ;;  %v703_v9 = vpop.eup %702  ;;  %v224_v51 = vsub.f32 %v221_v47, %v914_v22  ;;  %v195_v25 = vmul.f32 0.6931472, %v701_v58  ;;  %v184_v0 = vmul.f32 0.6931472, %v699_v40 }
  0xc3   :  { %v214_v4 = vmul.f32 %v685_v56, %v211_v45  ;;  %v283_v8 = vmul.f32 %v280_v46, %v199_v61  ;;  %v206_v10 = vsub.f32 0.0027777778, %v203_v43  ;;  %v705_v59 = vpop.eup %704  ;;  %v258_v56 = vadd.f32 %v928_v54, %v925_v53 }
  0xc4   :  { %v275_v16 = vsub.f32 0.008333334, %v272_v50  ;;  %v707_v61 = vpop.eup %706  ;;  %v227_v22 = vadd.f32 0.9189385, %v224_v51  ;;  %v222_v30 = vmul.f32 %v646_v33, %v195_v25  ;;  %v188_v40 = vadd.f32 %v184_v0, %v178_v38 }
  0xc5   :  { %v229_v26 = vadd.f32 %v226_v41, %v214_v4  ;;  %v292_v27 = vsub.f32 %v289_v32, %v283_v8  ;;  %v209_v60 = vmul.f32 %v206_v10, %v200_v42  ;;  %v201_v14 = vmul.f32 %v707_v61, %v707_v61 }
  0xc6   :  { %v278_v36 = vmul.f32 %v275_v16, %v200_v42  ;;  %v709_v41 = vpop.eup %708  ;;  %v269_v21 = vmul.f32 %v703_v9, %v946_v18  ;;  %v255_v46 = vadd.f32 %v252_v19, %v243_v63  ;;  %v261_v53 = vmul.f32 %v258_v56, %v948_v20 }
  0xc7   :  { %v232_v13 = vsub.f32 %v229_v26, %v187_v3  ;;  %v295_v24 = vsub.f32 %v292_v27, %v268_v7  ;;  %v212_v6 = vsub.f32 0.083333336, %v209_v60  ;;  %v204_v48 = vmul.f32 0.0007936508, %v201_v14 }
  0xc8   :  { %v281_v23 = vsub.f32 0.083333336, %v278_v36  ;;  %v273_v54 = vmul.f32 0.003968254, %v201_v14  ;;  %v651_v50 = vadd.f32 -1.0, %v885_v49  ;;  %v225_v33 = vsub.f32 %v222_v30, %v931_v55 }
  0xc9   :  { %v457_v32 = vmul.f32 %v937_v62, %v295_v24  ;;  %v215_v45 = vmul.f32 %v697_v34, %v212_v6  ;;  %v207_v38 = vsub.f32 0.0027777778, %v204_v48  ;;  %v288_v34 = vmul.f32 0.5, %v707_v61 }
  0xca   :  { %v284_v39 = vmul.f32 %v281_v23, %v200_v42  ;;  %v276_v52 = vsub.f32 0.008333334, %v273_v54  ;;  %v186_v19 = vmul.f32 0.6931472, %v705_v59  ;;  %v180_v57 = vmul.f32 0.6931472, %v709_v41  ;;  %v711_v7 = vpop.eup %710 }
  0xcb   :  { %v460_v47 = vsub.f32 %v457_v32, %v232_v13  ;;  %v230_v44 = vadd.f32 %v227_v22, %v215_v45  ;;  %v210_v58 = vmul.f32 %v207_v38, %v201_v14  ;;  %v264_v3 = vadd.f32 %v261_v53, %v255_v46 }
  0xcc   :  { %v293_v43 = vsub.f32 %v290_v29, %v284_v39  ;;  %v279_v20 = vmul.f32 %v276_v52, %v201_v14  ;;  %v228_v8 = vadd.f32 0.9189385, %v225_v33  ;;  %v291_v9 = vsub.f32 %v195_v25, %v288_v34 }
  0xcd   :  { %v463_v62 = vsel %vm31_vm0, %v460_v47, 0.0  ;;  %v233_v18 = vsub.f32 %v230_v44, %v188_v40  ;;  %v213_v29 = vsub.f32 0.083333336, %v210_v58  ;;  %v189_v10 = vadd.f32 %v186_v19, %v180_v57  ;;  %v27_v57 = vld [vmem:[%s1250_s4 + $0x8] sm:$0xff] }
  0xce   :  { %464 = vadd.xlane.f32.xlu1 %v463_v62  ;;  %v296_v42 = vsub.f32 %v293_v43, %v269_v21  ;;  %v282_v49 = vsub.f32 0.083333336, %v279_v20  ;;  %v270_v16 = vmul.f32 %v711_v7, %v264_v3  ;;  %v652_v60 = vadd.f32 -1.0, %v910_v15 }
  0xcf   :  { %v216_v51 = vmul.f32 %v707_v61, %v213_v29  ;;  %vm540_vm3 = vcmp.gt.f32.partialorder %v27_v57, 0.5  ;;  %v1267_v3 = vmov 0.0  }
  0xd0   :  { %v458_v4 = vmul.f32 %v651_v50, %v296_v42  ;;  %v285_v26 = vmul.f32 %v282_v49, %v201_v14  ;;  %v1018_v7 = vsel %vm540_vm3, 1.0, %v1267_v3 }
  0xd1   :  { %v231_v0 = vadd.f32 %v228_v8, %v216_v51  ;;  %1269 = vst [vmem:[#allocation12_spill] sm:$0xff] %v1018_v7 }
  0xd2   :  { %v461_v55 = vsub.f32 %v458_v4, %v233_v18  ;;  %v294_v63 = vsub.f32 %v291_v9, %v285_v26 }
  0xd3   :  { %v234_v36 = vsub.f32 %v231_v0, %v189_v10 }
  0xd4   :  { %v466_v27 = vsel %vm31_vm0, %v461_v55, 0.0  ;;  %v297_v59 = vsub.f32 %v294_v63, %v270_v16  ;;  %v556_v16 = vsel %vm548_vm5, %v1018_v7, 0.0 }
  0xd5   :  { %467 = vadd.xlane.f32.xlu1 %v466_v27 }
  0xd6   :  { %v459_v13 = vmul.f32 %v652_v60, %v297_v59 }
  0xd8   :  { %v462_v24 = vsub.f32 %v459_v13, %v234_v36  ;;  %v557_v13 = vrot.slane %v556_v16, 4 }
  0xda   :  { %v469_v56 = vsel %vm31_vm0, %v462_v24, 0.0 }
  0xdb   :  { %470 = vadd.xlane.f32.xlu1 %v469_v56 }
 0x12e   :  { %v40_v25 = vpop.xlane.xlu1 %39 }
 0x12f   :  { %712 = vrcp.f32 %v40_v25 }
 0x130   :  { %714 = vlog2.f32 %v40_v25 }
 0x139   :  { %v713_v61 = vpop.eup %712 }
 0x13a   :  { %v715_v6 = vpop.eup %714  ;;  %v42_v22 = vmul.f32 %v713_v61, %v870_v31 }
 0x13b   :  { %v44_v23 = vmul.f32 0.6931472, %v715_v6 }
 0x13c   :  { %v495_v30 = vmul.f32 %v42_v22, %v832_v2  ;;  %v494_v32 = vmul.f32 %v42_v22, %v827_v1  ;;  %v496_v21 = vmul.f32 %v42_v22, %v840_v5  ;;  %v976_v2 = vpop.xlane.xlu1 %110 }
 0x13d   :  { %v45_v15 = vsub.f32 %v851_v12, %v44_v23  ;;  %1264 = vst [vmem:[#allocation8_spill] sm:$0xff] %v976_v2  ;;  %v133_v39 = vmul.f32 1.442695, %v976_v2 }
 0x13e   :  { %v500_v40 = vsel %vm31_vm0, %v495_v30, 0.0  ;;  %v497_v14 = vsel %vm31_vm0, %v494_v32, 0.0  ;;  %v503_v31 = vsel %vm31_vm0, %v496_v21, 0.0 }
 0x13f   :  { %501 = vadd.xlane.f32.xlu0 %v500_v40  ;;  %498 = vadd.xlane.f32.xlu1 %v497_v14  ;;  %v46_v41 = vmul.f32 %v45_v15, %v42_v22  ;;  %716 = vpow2.f32 %v133_v39  ;;  %v1074_v14 = vadd.f32 %v557_v13, %v556_v16 }
 0x140   :  { %v978_v1 = vpop.xlane.xlu1 %113 }
 0x141   :  { %v47_v45 = vsel %vm31_vm0, %v46_v41, 0.0  ;;  %1265 = vst [vmem:[#allocation9_spill] sm:$0xff] %v978_v1  ;;  %v135_v46 = vmul.f32 1.442695, %v978_v1 }
 0x143   :  { %48 = vadd.xlane.f32.xlu1 %v47_v45  ;;  %718 = vpow2.f32 %v135_v46 }
 0x144   :  { %v980_v12 = vpop.xlane.xlu1 %116 }
 0x145   :  { %1266 = vst [vmem:[#allocation10_spill] sm:$0xff] %v980_v12  ;;  %v137_v5 = vmul.f32 1.442695, %v980_v12 }
 0x147   :  { %504 = vadd.xlane.f32.xlu1 %v503_v31  ;;  %720 = vpow2.f32 %v137_v5 }
 0x148   :  { %v70_v47 = vpop.xlane.xlu1 %69 }
 0x149   :  { %v95_v53 = vmul.f32 %v875_v35, %v70_v47  ;;  %v717_v43 = vpop.eup %716 }
 0x14b   :  { %v130_v44 = vadd.f32 8.0, %v95_v53 }
 0x14c   :  { %v73_v48 = vpop.xlane.xlu1 %72 }
 0x14d   :  { %v96_v54 = vmul.f32 %v867_v28, %v73_v48  ;;  %v719_v62 = vpop.eup %718  ;;  %v987_v38 = vsub.f32 %v130_v44, %v717_v43  ;;  %v26_v28 = vld [vmem:[%s1250_s4] sm:$0xff] }
 0x14e   :  { %vm539_vm2 = vcmp.gt.f32.partialorder %v26_v28, 0.5 }
 0x14f   :  { %v131_v50 = vadd.f32 8.0, %v96_v54  ;;  %v993_v42 = vadd.f32 6.0, %v987_v38  ;;  %v1012_v20 = vsel %vm539_vm2, 1.0, %v1267_v3  ;;  %v298_v49 = vadd.f32 1.0, %v987_v38 }
 0x150   :  { %v76_v33 = vpop.xlane.xlu1 %75  ;;  %1268 = vst [vmem:[#allocation11_spill] sm:$0xff] %v1012_v20  ;;  %v549_v8 = vsel %vm548_vm5, %v1012_v20, 0.0  ;;  %v301_v9 = vadd.f32 2.0, %v987_v38  ;;  %v304_v55 = vadd.f32 3.0, %v987_v38  ;;  %v307_v10 = vadd.f32 4.0, %v987_v38 }
 0x151   :  { %v97_v52 = vmul.f32 %v878_v37, %v76_v33  ;;  %v990_v34 = vsub.f32 %v131_v50, %v719_v62  ;;  %v721_v19 = vpop.eup %720  ;;  %722 = vrcp.f32 %v993_v42  ;;  %v28_v37 = vld [vmem:[%s1250_s4 + $0x10] sm:$0xff]  ;;  %v310_v51 = vadd.f32 5.0, %v987_v38 }
 0x152   :  { %vm541_vm4 = vcmp.gt.f32.partialorder %v28_v37, 0.5  ;;  %v550_v27 = vrot.slane %v549_v8, 4  ;;  %v316_v24 = vmul.f32 %v298_v49, %v987_v38  ;;  %v319_v56 = vmul.f32 %v304_v55, %v301_v9 }
 0x153   :  { %v132_v18 = vadd.f32 8.0, %v97_v52  ;;  %v996_v35 = vadd.f32 6.0, %v990_v34  ;;  %v1021_v29 = vsel %vm541_vm4, 1.0, %v1267_v3  ;;  %v1043_v60 = vadd.f32 1.0, %v990_v34 }
 0x154   :  { %1270 = vst [vmem:[#allocation13_spill] sm:$0xff] %v1021_v29  ;;  %v1037_v0 = vsel %vm548_vm5, %v1021_v29, 0.0  ;;  %v1046_v36 = vadd.f32 2.0, %v990_v34  ;;  %v1049_v59 = vadd.f32 3.0, %v990_v34  ;;  %v322_v25 = vmul.f32 %v310_v51, %v307_v10 }
 0x155   :  { %v1004_v58 = vsub.f32 %v132_v18, %v721_v19  ;;  %724 = vrcp.f32 %v996_v35  ;;  %v1054_v61 = vadd.f32 4.0, %v990_v34  ;;  %v1057_v6 = vadd.f32 5.0, %v990_v34 }
 0x156   :  { %v1068_v32 = vadd.f32 %v550_v27, %v549_v8  ;;  %v317_v15 = vmul.f32 %v1043_v60, %v990_v34  ;;  %v320_v40 = vmul.f32 %v1049_v59, %v1046_v36  ;;  %v325_v41 = vmul.f32 %v319_v56, %v316_v24 }
 0x157   :  { %v1015_v4 = vadd.f32 6.0, %v1004_v58  ;;  %v394_v45 = vmul.f32 %v322_v25, %v319_v56  ;;  %v403_v21 = vmul.f32 %v322_v25, %v316_v24  ;;  %v323_v31 = vmul.f32 %v1057_v6, %v1054_v61 }
 0x158   :  { %v1079_v39 = vadd.f32 1.0, %v1004_v58  ;;  %v1082_v46 = vadd.f32 2.0, %v1004_v58  ;;  %v1089_v53 = vadd.f32 3.0, %v1004_v58  ;;  %v391_v54 = vadd.f32 %v298_v49, %v987_v38 }
 0x159   :  { %726 = vrcp.f32 %v1015_v4  ;;  %v400_v44 = vadd.f32 %v304_v55, %v301_v9  ;;  %v1093_v43 = vmul.f32 %v320_v40, %v317_v15  ;;  %v647_v62 = vadd.f32 -0.5, %v993_v42 }
 0x15a   :  { %728 = vlog2.f32 %v993_v42  ;;  %v412_v52 = vadd.f32 %v310_v51, %v307_v10  ;;  %v397_v19 = vmul.f32 %v394_v45, %v391_v54  ;;  %v1103_v8 = vmul.f32 %v1079_v39, %v1004_v58 }
 0x15b   :  { %v1033_v26 = vpop.eup %722  ;;  %730 = vlog2.f32 %v996_v35  ;;  %v406_v28 = vmul.f32 %v403_v21, %v400_v44  ;;  %v1107_v49 = vmul.f32 %v1089_v53, %v1082_v46  ;;  %v328_v9 = vmul.f32 %v325_v41, %v322_v25 }
 0x15c   :  { %732 = vlog2.f32 %v70_v47  ;;  %v1062_v23 = vmul.f32 %v1033_v26, %v1033_v26  ;;  %v1119_v13 = vadd.f32 4.0, %v1004_v58  ;;  %v1122_v24 = vadd.f32 5.0, %v1004_v58 }
 0x15d   :  { %734 = vlog2.f32 %v73_v48  ;;  %v1128_v45 = vmul.f32 %v412_v52, %v325_v41  ;;  %v648_v21 = vadd.f32 -0.5, %v996_v35  ;;  %v392_v52 = vadd.f32 %v1043_v60, %v990_v34 }
 0x15e   :  { %736 = vlog2.f32 %v76_v33  ;;  %v358_v48 = vmul.f32 0.0007936508, %v1062_v23  ;;  %v427_v10 = vmul.f32 0.003968254, %v1062_v23  ;;  %v404_v22 = vmul.f32 %v323_v31, %v317_v15 }
 0x15f   :  { %v1040_v63 = vpop.eup %724  ;;  %738 = vlog2.f32 %v1015_v4  ;;  %v401_v12 = vadd.f32 %v1049_v59, %v1046_v36 }
 0x160   :  { %v1066_v30 = vmul.f32 %v1040_v63, %v1040_v63  ;;  %740 = vlog2.f32 %v322_v25  ;;  %v361_v37 = vsub.f32 0.0027777778, %v358_v48  ;;  %v1126_v25 = vadd.f32 %v406_v28, %v397_v19 }
 0x161   :  { %742 = vlog2.f32 %v325_v41  ;;  %v430_v41 = vsub.f32 0.008333334, %v427_v10  ;;  %v407_v59 = vmul.f32 %v404_v22, %v401_v12 }
 0x162   :  { %v359_v5 = vmul.f32 0.0007936508, %v1066_v30  ;;  %744 = vlog2.f32 %v323_v31  ;;  %v428_v27 = vmul.f32 0.003968254, %v1066_v30  ;;  %v364_v54 = vmul.f32 %v361_v37, %v1062_v23 }
 0x163   :  { %v1084_v47 = vpop.eup %726  ;;  %746 = vlog2.f32 %v1093_v43  ;;  %v324_v37 = vmul.f32 %v1122_v24, %v1119_v13 }
 0x164   :  { %v729_v50 = vpop.eup %728  ;;  %v1099_v57 = vmul.f32 %v1084_v47, %v1084_v47  ;;  %v362_v3 = vsub.f32 0.0027777778, %v359_v5  ;;  %748 = vrcp.f32 %v328_v9  ;;  %v431_v29 = vsub.f32 0.008333334, %v428_v27 }
 0x165   :  { %v731_v18 = vpop.eup %730  ;;  %v1109_v55 = vmul.f32 0.6931472, %v729_v50  ;;  %v395_v50 = vmul.f32 %v323_v31, %v320_v40  ;;  %v367_v60 = vsub.f32 0.083333336, %v364_v54 }
 0x166   :  { %v1113_v51 = vpop.eup %732  ;;  %v1115_v16 = vmul.f32 0.6931472, %v731_v18  ;;  %v360_v48 = vmul.f32 0.0007936508, %v1099_v57  ;;  %v365_v44 = vmul.f32 %v362_v3, %v1066_v30  ;;  %v1138_v18 = vmul.f32 %v1107_v49, %v1103_v8 }
 0x167   :  { %v1124_v56 = vpop.eup %734  ;;  %v376_v19 = vmul.f32 %v647_v62, %v1109_v55  ;;  %v329_v3 = vmul.f32 %v1093_v43, %v323_v31  ;;  %v413_v62 = vadd.f32 %v1057_v6, %v1054_v61  ;;  %v398_v20 = vmul.f32 %v395_v50, %v392_v52 }
 0x168   :  { %v1132_v5 = vpop.eup %736  ;;  %v377_v33 = vmul.f32 %v648_v21, %v1115_v16  ;;  %v363_v9 = vsub.f32 0.0027777778, %v360_v48  ;;  %v368_v7 = vsub.f32 0.083333336, %v365_v44  ;;  %750 = vlog2.f32 %v1138_v18 }
 0x169   :  { %1271 = vst [vmem:[#allocation14_spill] sm:$0xff] %v1132_v5  ;;  %v739_v28 = vpop.eup %738  ;;  %v379_v27 = vsub.f32 %v376_v19, %v993_v42  ;;  %v433_v21 = vmul.f32 %v430_v41, %v1062_v23  ;;  %v429_v31 = vmul.f32 0.003968254, %v1099_v57  ;;  %v434_v61 = vmul.f32 %v431_v29, %v1066_v30 }
 0x16a   :  { %v741_v40 = vpop.eup %740  ;;  %v1154_v1 = vmul.f32 0.6931472, %v739_v28  ;;  %v380_v36 = vsub.f32 %v377_v33, %v996_v35  ;;  %752 = vlog2.f32 %v324_v37  ;;  %v366_v54 = vmul.f32 %v363_v9, %v1099_v57 }
 0x16b   :  { %v743_v10 = vpop.eup %742  ;;  %754 = vrcp.f32 %v329_v3  ;;  %v649_v44 = vadd.f32 -0.5, %v1015_v4  ;;  %v338_v42 = vmul.f32 0.6931472, %v741_v40  ;;  %v370_v50 = vmul.f32 %v1033_v26, %v367_v60 }
 0x16c   :  { %v745_v15 = vpop.eup %744  ;;  %v332_v48 = vmul.f32 0.6931472, %v743_v10  ;;  %v442_v19 = vmul.f32 0.5, %v1033_v26  ;;  %v371_v41 = vmul.f32 %v1040_v63, %v368_v7  ;;  %v382_v52 = vadd.f32 0.9189385, %v379_v27  ;;  %v465_v27 = vpop.xlane.xlu1 %464 }
 0x16d   :  { %v747_v6 = vpop.eup %746  ;;  %v436_v35 = vsub.f32 0.083333336, %v433_v21  ;;  %v378_v12 = vmul.f32 %v649_v44, %v1154_v1  ;;  %v432_v29 = vsub.f32 0.008333334, %v429_v31  ;;  %v383_v33 = vadd.f32 0.9189385, %v380_v36 }
 0x16e   :  { %v334_v22 = vmul.f32 0.6931472, %v747_v6  ;;  %v437_v28 = vsub.f32 0.083333336, %v434_v61  ;;  %v330_v3 = vmul.f32 %v1138_v18, %v324_v37  ;;  %v749_v9 = vpop.eup %748  ;;  %v343_v10 = vadd.f32 %v338_v42, %v332_v48 }
 0x16f   :  { %v340_v2 = vmul.f32 0.6931472, %v745_v15  ;;  %v410_v40 = vadd.f32 %v407_v59, %v398_v20  ;;  %v369_v5 = vsub.f32 0.083333336, %v366_v54  ;;  %v385_v60 = vadd.f32 %v382_v52, %v370_v50 }
 0x170   :  { %v386_v11 = vadd.f32 %v383_v33, %v371_v41  ;;  %v443_v26 = vmul.f32 0.5, %v1040_v63  ;;  %v396_v7 = vmul.f32 %v324_v37, %v1107_v49  ;;  %v381_v21 = vsub.f32 %v378_v12, %v1015_v4 }
 0x171   :  { %v393_v31 = vadd.f32 %v1079_v39, %v1004_v58  ;;  %v405_v36 = vmul.f32 %v324_v37, %v1103_v8  ;;  %v435_v61 = vmul.f32 %v432_v29, %v1099_v57  ;;  %v439_v20 = vmul.f32 %v436_v35, %v1062_v23 }
 0x172   :  { %v751_v6 = vpop.eup %750  ;;  %v344_v15 = vadd.f32 %v340_v2, %v334_v22  ;;  %v440_v59 = vmul.f32 %v437_v28, %v1066_v30  ;;  %756 = vrcp.f32 %v330_v3  ;;  %v445_v63 = vsub.f32 %v1109_v55, %v442_v19 }
 0x173   :  { %v416_v49 = vmul.f32 %v413_v62, %v1093_v43  ;;  %v372_v4 = vmul.f32 %v1084_v47, %v369_v5  ;;  %v402_v39 = vadd.f32 %v1089_v53, %v1082_v46  ;;  %v388_v8 = vsub.f32 %v385_v60, %v343_v10  ;;  %v468_v46 = vpop.xlane.xlu1 %467 }
 0x174   :  { %v753_v48 = vpop.eup %752  ;;  %v389_v37 = vsub.f32 %v386_v11, %v344_v15  ;;  %v446_v54 = vsub.f32 %v1115_v16, %v443_v26  ;;  %v399_v44 = vmul.f32 %v396_v7, %v393_v31  ;;  %v336_v2 = vmul.f32 0.6931472, %v751_v6 }
 0x175   :  { %v755_v23 = vpop.eup %754  ;;  %v384_v42 = vadd.f32 0.9189385, %v381_v21  ;;  %v408_v30 = vmul.f32 %v405_v36, %v402_v39  ;;  %v438_v50 = vsub.f32 0.083333336, %v435_v61  ;;  %v418_v55 = vadd.f32 %v1128_v45, %v1126_v25 }
 0x176   :  { %v448_v43 = vsub.f32 %v445_v63, %v439_v20  ;;  %v419_v62 = vadd.f32 %v416_v49, %v410_v40  ;;  %v449_v5 = vsub.f32 %v446_v54, %v440_v59  ;;  %v559_v19 = vrot.slane %v1074_v14, 2  ;;  %v1275_v54 = vld [vmem:[#allocation14_spill] sm:$0xff] }
 0x177   :  { %v342_v53 = vmul.f32 0.6931472, %v753_v48  ;;  %v387_v41 = vadd.f32 %v384_v42, %v372_v4  ;;  %v444_v11 = vmul.f32 0.5, %v1084_v47  ;;  %v424_v16 = vmul.f32 %v749_v9, %v418_v55  ;;  %v471_v36 = vpop.xlane.xlu1 %470 }
 0x178   :  { %v653_v52 = vadd.f32 -8.525162, %v388_v8  ;;  %v425_v35 = vmul.f32 %v755_v23, %v419_v62  ;;  %v654_v12 = vadd.f32 -8.525162, %v389_v37  ;;  %v411_v22 = vadd.f32 %v408_v30, %v399_v44  ;;  %v1274_v8 = vld [vmem:[#allocation6_spill] sm:$0xff] }
 0x179   :  { %v345_v29 = vadd.f32 %v342_v53, %v336_v2  ;;  %v414_v33 = vadd.f32 %v1122_v24, %v1119_v13  ;;  %v441_v25 = vmul.f32 %v438_v50, %v1099_v57  ;;  %v1272_v45 = vrot.slane %v1037_v0, 4 }
 0x17a   :  { %v451_v3 = vsub.f32 %v448_v43, %v424_v16  ;;  %v452_v10 = vsub.f32 %v449_v5, %v425_v35  ;;  %v447_v9 = vsub.f32 %v1154_v1, %v444_v11  ;;  %v1273_v60 = vrot.slane %v1068_v32, 2  ;;  %v1278_v16 = vld [vmem:[#allocation7_spill] sm:$0xff] }
 0x17b   :  { %v565_v28 = vadd.f32 %v1272_v45, %v1037_v0  ;;  %v390_v40 = vsub.f32 %v387_v41, %v345_v29  ;;  %v417_v47 = vmul.f32 %v414_v33, %v1138_v18  ;;  %v656_v13 = vadd.f32 -8.0, %v987_v38 }
 0x17c   :  { %v553_v26 = vadd.f32 %v1273_v60, %v1068_v32  ;;  %v757_v7 = vpop.eup %756  ;;  %v475_v24 = vadd.f32 %v653_v52, %v465_v27  ;;  %v657_v57 = vadd.f32 -8.0, %v990_v34  ;;  %v476_v21 = vadd.f32 %v654_v12, %v468_v46  ;;  %v1277_v46 = vld [vmem:[#allocation9_spill] sm:$0xff] }
 0x17d   :  { %v420_v31 = vadd.f32 %v417_v47, %v411_v22  ;;  %v450_v0 = vsub.f32 %v447_v9, %v441_v25  ;;  %v560_v61 = vadd.f32 %v559_v19, %v1074_v14  ;;  %v481_v6 = vmul.f32 %v656_v13, %v451_v3  ;;  %v1276_v19 = vld [vmem:[#allocation8_spill] sm:$0xff] }
 0x17e   :  { %v482_v18 = vmul.f32 %v657_v57, %v452_v10  ;;  %v78_v1 = vmul.f32 0.6931472, %v1113_v51  ;;  %v80_v20 = vmul.f32 0.6931472, %v1124_v56  ;;  %v655_v32 = vadd.f32 -8.525162, %v390_v40 }
 0x17f   :  { %v426_v15 = vmul.f32 %v757_v7, %v420_v31  ;;  %v554_v59 = vrot.slane %v553_v26, 1  ;;  %v566_v63 = vrot.slane %v565_v28, 2  ;;  %v484_v38 = vsub.f32 %v475_v24, %v481_v6  ;;  %v1279_v7 = vld [vmem:[#allocation11_spill] sm:$0xff]  ;;  %v1280_v24 = vld [vmem:[#allocation12_spill] sm:$0xff] }
 0x180   :  { %v485_v27 = vsub.f32 %v476_v21, %v482_v18  ;;  %v487_v34 = vstv %s1246_s0  ;;  %v561_v14 = vrot.slane %v560_v61, 1  ;;  %v658_v48 = vadd.f32 -8.0, %v1004_v58  ;;  %v1281_v21 = vld [vmem:[#allocation10_spill] sm:$0xff]  ;;  %s790_s0 = smov [#allocation3]  }
 0x181   :  { %v453_v49 = vsub.f32 %v450_v0, %v426_v15  ;;  %v83_v51 = vadd.f32 %v78_v1, %v857_v17  ;;  %v84_v56 = vadd.f32 %v80_v20, %v1274_v8  ;;  %v477_v37 = vadd.f32 %v655_v32, %v471_v36  ;;  %s635_s7 = sshll.u32 %s790_s0, 4  ;;  %s636_s7 = int_to_ptr.vmem [resolvable:$true] %s635_s7 }
 0x182   :  { %v82_v44 = vmul.f32 0.6931472, %v1275_v54  ;;  %v1208_v23 = vadd.f32 %v554_v59, %v553_v26  ;;  %v567_v2 = vadd.f32 %v566_v63, %v565_v28  ;;  %v488_v42 = vmul.f32 %v487_v34, %v484_v38  ;;  %s764_s9 = scalar_lea.vmem %s636_s7, 16  ;;  %s768_s10 = scalar_lea.vmem %s636_s7, 32 }
 0x183   :  { %v489_v30 = vmul.f32 %v487_v34, %v485_v27  ;;  %v483_v43 = vmul.f32 %v658_v48, %v453_v49  ;;  %v1210_v5 = vadd.f32 %v561_v14, %v560_v61  ;;  %v118_v58 = vsub.f32 %v83_v51, %v1276_v19  ;;  %v1282_v48 = vld [vmem:[#allocation13_spill] sm:$0xff]  ;;  %p765_p0 = scmp.ne.s32.totalorder %s636_s7, %s764_s9  ;;  %p769_p1 = scmp.lt.s32.totalorder %s636_s7, %s636_s7 }
 0x184   :  { %v119_v17 = vsub.f32 %v84_v56, %v1277_v46  ;;  %v85_v52 = vadd.f32 %v82_v44, %v1278_v16  ;;  %v568_v35 = vrot.slane %v567_v2, 1  ;;  %v594_v12 = vmax.f32 %v1208_v23, 1.0  ;;  %p770_p2 = scmp.lt.s32.totalorder %s768_s10, %s764_s9 }
 0x185   :  { %v486_v11 = vsub.f32 %v477_v37, %v483_v43  ;;  %v491_v29 = vadd.f32 %v488_v42, %v118_v58  ;;  %v595_v28 = vmax.f32 %v1210_v5, 1.0  ;;  %vm603_vm6 = vcmp.gt.f32.partialorder %v1208_v23, 0.0 }
 0x186   :  { %v492_v22 = vadd.f32 %v489_v30, %v119_v17  ;;  %v1217_v9 = vadd.f32 %v568_v35, %v567_v2  ;;  %758 = vrcp.f32 %v594_v12  ;;  %v120_v31 = vsub.f32 %v85_v52, %v1281_v21  ;;  %p771_p3 = por %p770_p2, %p769_p1 }
 0x187   :  { %v490_v47 = vmul.f32 %v487_v34, %v486_v11  ;;  %760 = vrcp.f32 %v595_v28  ;;  %vm604_vm7 = vcmp.gt.f32.partialorder %v1210_v5, 0.0 }
 0x188   :  { %v596_v38 = vmax.f32 %v1217_v9, 1.0  ;;  %vm605_vm9 = vcmp.gt.f32.partialorder %v1217_v9, 0.0  ;;  %p772_p4 = pnand %p771_p3, %p765_p0 }
 0x189   :  { %v493_v15 = vadd.f32 %v490_v47, %v120_v31 }
 0x18a   :  { %762 = vrcp.f32 %v596_v38 }
 0x190   :  { %v759_v44 = vpop.eup %758 }
 0x191   :  { %v761_v43 = vpop.eup %760 }
 0x1cc   :  { %v499_v4 = vpop.xlane.xlu1 %498  ;;  %v502_v39 = vpop.xlane.xlu0 %501 }
 0x1cd   :  { %v506_v50 = vsub.f32 %v499_v4, %v83_v51  ;;  %v507_v55 = vsub.f32 %v502_v39, %v84_v56 }
 0x1d0   :  { %v49_v62 = vpop.xlane.xlu1 %48 }
 0x1d1   :  { %v509_v53 = vsub.f32 %v49_v62, %v506_v50  ;;  %v510_v41 = vsub.f32 %v49_v62, %v507_v55 }
 0x1d3   :  { %v512_v33 = vmul.f32 0.01, %v509_v53  ;;  %v513_v25 = vmul.f32 0.01, %v510_v41 }
 0x1d4   :  { %v505_v45 = vpop.xlane.xlu1 %504 }
 0x1d5   :  { %v515_v3 = vsub.f32 %v491_v29, %v512_v33  ;;  %v516_v10 = vsub.f32 %v492_v22, %v513_v25  ;;  %v508_v40 = vsub.f32 %v505_v45, %v85_v52 }
 0x1d7   :  { %v518_v60 = vrot.slane %v515_v3, 4  ;;  %v524_v26 = vrot.slane %v516_v10, 4  ;;  %v570_v13 = vmul.f32 %v1279_v7, %v515_v3  ;;  %v571_v57 = vmul.f32 %v1280_v24, %v516_v10 }
 0x1d8   :  { %v511_v0 = vsub.f32 %v49_v62, %v508_v40 }
 0x1d9   :  { %v519_v36 = vadd.f32 %v518_v60, %v515_v3  ;;  %v525_v61 = vadd.f32 %v524_v26, %v516_v10  ;;  %v573_v6 = vsel %vm548_vm5, %v570_v13, 0.0  ;;  %v580_v18 = vsel %vm548_vm5, %v571_v57, 0.0  ;;  %v763_v3 = vpop.eup %762 }
 0x1da   :  { %v574_v1 = vrot.slane %v573_v6, 4  ;;  %v581_v20 = vrot.slane %v580_v18, 4  ;;  %v514_v32 = vmul.f32 0.01, %v511_v0 }
 0x1db   :  { %v520_v59 = vrot.slane %v519_v36, 2  ;;  %v526_v63 = vrot.slane %v525_v61, 2 }
 0x1dc   :  { %v575_v27 = vadd.f32 %v574_v1, %v573_v6  ;;  %v582_v34 = vadd.f32 %v581_v20, %v580_v18  ;;  %v517_v49 = vsub.f32 %v493_v15, %v514_v32 }
 0x1dd   :  { %v521_v4 = vadd.f32 %v520_v59, %v519_v36  ;;  %v527_v39 = vadd.f32 %v526_v63, %v525_v61 }
 0x1de   :  { %v530_v14 = vrot.slane %v517_v49, 4  ;;  %v572_v51 = vmul.f32 %v1282_v48, %v517_v49  ;;  %v576_v8 = vrot.slane %v575_v27, 2  ;;  %v583_v56 = vrot.slane %v582_v34, 2 }
 0x1df   :  { %v522_v37 = vrot.slane %v521_v4, 1  ;;  %v528_v54 = vrot.slane %v527_v39, 1 }
 0x1e0   :  { %v531_v2 = vadd.f32 %v530_v14, %v517_v49  ;;  %v587_v42 = vsel %vm548_vm5, %v572_v51, 0.0  ;;  %v577_v30 = vadd.f32 %v576_v8, %v575_v27  ;;  %v584_v50 = vadd.f32 %v583_v56, %v582_v34 }
 0x1e1   :  { %v588_v55 = vrot.slane %v587_v42, 4  ;;  %v523_v17 = vadd.f32 %v522_v37, %v521_v4  ;;  %v529_v53 = vadd.f32 %v528_v54, %v527_v39 }
 0x1e2   :  { %v532_v62 = vrot.slane %v531_v2, 2  ;;  %v578_v19 = vrot.slane %v577_v30, 1  ;;  %v585_v58 = vrot.slane %v584_v50, 1 }
 0x1e3   :  { %v589_v46 = vadd.f32 %v588_v55, %v587_v42  ;;  %v536_v33 = vmul.f32 0.125, %v523_v17  ;;  %v537_v25 = vmul.f32 0.125, %v529_v53 }
 0x1e4   :  { %v533_v41 = vadd.f32 %v532_v62, %v531_v2  ;;  %v579_v11 = vadd.f32 %v578_v19, %v577_v30  ;;  %v586_v16 = vadd.f32 %v585_v58, %v584_v50 }
 0x1e5   :  { %v590_v52 = vrot.slane %v589_v46, 2 }
 0x1e6   :  { %v534_v35 = vrot.slane %v533_v41, 1  ;;  %v598_v12 = vmul.f32 %v759_v44, %v579_v11  ;;  %v600_v29 = vmul.f32 %v761_v43, %v586_v16 }
 0x1e7   :  { %v591_v22 = vadd.f32 %v590_v52, %v589_v46 }
 0x1e8   :  { %v606_v45 = vsel %vm603_vm6, %v598_v12, 0.0  ;;  %v607_v28 = vsel %vm604_vm7, %v600_v29, 0.0  ;;  %v535_v40 = vadd.f32 %v534_v35, %v533_v41 }
 0x1e9   :  { %v592_v10 = vrot.slane %v591_v22, 1  ;;  %v609_v47 = vadd.f32 %v606_v45, %v536_v33  ;;  %v610_v60 = vadd.f32 %v607_v28, %v537_v25 }
 0x1ea   :  { %v538_v7 = vmul.f32 0.125, %v535_v40 }
 0x1eb   :  { %v593_v26 = vadd.f32 %v592_v10, %v591_v22  ;;  %v613_v5 = vsel %vm612_vm8, %v609_v47, 0.0  ;;  %v614_v13 = vsel %vm612_vm8, %v610_v60, 0.0 }
 0x1ec   :  { %v615_v21 = vadd.f32 %v614_v13, %v613_v5 }
 0x1ed   :  { %v602_v23 = vmul.f32 %v763_v3, %v593_v26 }
 0x1ef   :  { %v608_v24 = vsel %vm605_vm9, %v602_v23, 0.0 }
 0x1f0   :  { %v611_v57 = vadd.f32 %v608_v24, %v538_v7 }
 0x1f2   :  { %v616_v31 = vsel %vm612_vm8, %v611_v57, 0.0 }
 0x1f3   :  { %v617_v0 = vadd.f32 %v616_v31, %v615_v21 }
 0x1f5   :  { %618 = vadd.xlane.f32.xlu1 %v617_v0 }
 0x282   :  { %v619_v36 = vpop.xlane.xlu1 %618 }
 0x283   :  { %v620_v61 = vrot.slane %v619_v36, 4 }
 0x285   :  { %v621_v6 = vadd.f32 %v620_v61, %v619_v36 }
 0x287   :  { %v622_v18 = vrot.slane %v621_v6, 2 }
 0x289   :  { %v623_v1 = vadd.f32 %v622_v18, %v621_v6 }
 0x28b   :  { %v624_v20 = vrot.slane %v623_v1, 1 }
 0x28d   :  { %v625_v9 = vadd.f32 %v624_v20, %v623_v1 }
 0x28f   :  { %662 = vpush %v625_v9 }
 0x2c0   :  { %s663_s8 = spop %662 }
 0x2c1   :  { %v627_v15 = vstv %s663_s8 }
 0x2c2   :  { %628 = vst.msk [vmem:[#allocation3] sm:$0x1] %vm612_vm8, %v627_v15 }
 0x2c3   :  { %775 = shalt.err (!%p772_p4)
}
 0x2c4   :  { %s776_s13 = scalar_lea.hbm %s1251_s5, 16 }
 0x2c5   :  { %p777_p5 = scmp.ne.s32.totalorder %s1251_s5, %s776_s13  ;;  %p780_p6 = scmp.lt.u32.totalorder %s776_s13, %s1251_s5 }
 0x2c7   :  { %p782_p7 = pnand %p780_p6, %p777_p5 }
 0x2c9   :  { %785 = shalt.err (!%p782_p7)
}
 0x2ca   :  { %638 = dma.vmem_to_hbm [thread:$0]  %s636_s7, 16, %s1251_s5, [#allocation4]  }
 0x2cb   :  { %786 = dma.done.wait [#allocation4], 16  }
 0x2cc   :  { %787 = vsyncadd [#allocation4], 4294967280 }
 0x2cd   :  { %642 = vsyncpa [#allocation4], 1 }

</bundles_post_ra>
